<compile_context>
chip_gen: v6e
topology: v6e:2x2x1
jax: 0.10.0
libtpu: 0.0.40
codegen_flags: <defaults>
</compile_context>

<pallas_src>
import functools

import jax
import jax.numpy as jnp
from jax.experimental import pallas as pl
from jax.experimental.pallas import tpu as pltpu


def _h_swish_kernel(x_ref, o_ref):
    x = x_ref[...]
    # h_sigmoid(x) = relu6(x + 3) / 6 ; h_swish(x) = x * h_sigmoid(x)
    o_ref[...] = (x * (jnp.clip(x + 3.0, 0.0, 6.0) * (1.0 / 6.0))).astype(o_ref.dtype)


def _round_up(a, m):
    return -(-a // m) * m


@functools.lru_cache(maxsize=1)
def _chip_params():
    """Best-effort (per-TensorCore VMEM bytes, #TensorCores behind one pallas_call)."""
    kind = ""
    try:
        kind = jax.devices()[0].device_kind.lower()
    except Exception:
        pass
    num_tc = 2 if "v7" in kind else 1

    vmem_cap = None
    try:
        info = pltpu.get_tpu_info()
        for attr in ("vmem_capacity_bytes", "vmem_size_bytes", "vmem_bytes"):
            v = getattr(info, attr, None)
            if v:
                vmem_cap = int(v)
                break
    except Exception:
        vmem_cap = None
    if vmem_cap is None or vmem_cap <= 0:
        # v5e / v6e have 128 MiB VMEM per TensorCore; assume the smaller v7x
        # budget (64 MiB / core) whenever the chip can't be positively identified.
        if ("v5 lite" in kind) or ("v5e" in kind) or ("v6" in kind):
            vmem_cap = 128 << 20
        else:
            vmem_cap = 64 << 20
    if num_tc >= 2:
        # capacity may be reported per chip; budget per TensorCore on v7x.
        vmem_cap = min(vmem_cap, 64 << 20)
    return int(vmem_cap), num_tc


def _block_budget():
    """(bytes per VMEM buffer, vmem_limit_bytes, num TensorCores)."""
    vmem_cap, num_tc = _chip_params()
    budget = int(vmem_cap * 0.70)                       # headroom for compiler scratch
    # 1 input + 1 output, double-buffered -> 4 buffers of `block_bytes` each.
    block_bytes = min(16 << 20, max(1 << 20, (budget - (8 << 20)) // 4))
    vmem_limit = max(32 << 20, min(budget, 4 * block_bytes + (8 << 20)))
    return block_bytes, vmem_limit, num_tc


def _pick_tile_rows(rows, sub_mult, lanes, itemsize, block_bytes, num_tc):
    """Rows per block: big blocks, sublane-aligned, balanced across TensorCores."""
    max_rows = max(sub_mult, (block_bytes // (lanes * itemsize)) // sub_mult * sub_mult)
    if rows <= max_rows:
        if num_tc >= 2 and rows >= 2 * sub_mult:
            # Two blocks so both v7x TensorCores get work.
            half = -(-rows // 2)
            return min(rows, _round_up(half, sub_mult))
        # Single-TC chip (v5e/v6e) or tiny tensor: one block, no extra grid step.
        return rows
    n_steps = -(-rows // max_rows)
    if num_tc > 1 and n_steps % num_tc:
        n_steps += num_tc - (n_steps % num_tc)           # even step count for 2 TCs
    tile = min(max_rows, _round_up(-(-rows // n_steps), sub_mult))
    if rows % tile:
        # Prefer a nearby exact divisor of `rows` -> no masked tail block.
        lo = max(sub_mult, tile // 2)
        for cand in range(tile, lo - 1, -sub_mult):
            if rows % cand == 0 and (num_tc == 1 or (rows // cand) % num_tc == 0):
                return cand
    return tile


def h_swish(x, donate_input=False):
    """Elementwise h_swish on a tensor of any shape (NCHW in the PyTorch module)."""
    orig_shape = x.shape
    dtype = x.dtype
    total = x.size
    if total == 0:
        return x

    itemsize = jnp.dtype(dtype).itemsize
    sub_mult = max(8, 32 // itemsize)        # sublane multiple: 8 f32, 16 bf16, 32 int8
    block_bytes, vmem_limit, num_tc = _block_budget()

    x_flat = x.reshape(-1)                   # zero-copy for default row-major layouts

    common = dict(
        compiler_params=pltpu.CompilerParams(
            dimension_semantics=("parallel",),
            vmem_limit_bytes=vmem_limit,
        ),
        cost_estimate=pl.CostEstimate(
            flops=5 * total, transcendentals=0, bytes_accessed=2 * total * itemsize),
        input_output_aliases=({0: 0} if donate_input else {}),
    )

    # --- pick a zero-copy 2-D (rows, lanes) view when possible -----------------
    lanes = None
    for cand in (2048, 1024, 512, 256, 128):
        if total % cand == 0 and (total // cand) >= sub_mult:
            lanes = cand
            break
    if lanes is None and total % 128 == 0:
        lanes = 128

    if lanes is not None:
        rows = total // lanes
        x2d = x_flat.reshape(rows, lanes)
        tile_rows = _pick_tile_rows(rows, sub_mult, lanes, itemsize, block_bytes, num_tc)
        grid = (pl.cdiv(rows, tile_rows),)
        out2d = pl.pallas_call(
            _h_swish_kernel,
            out_shape=jax.ShapeDtypeStruct((rows, lanes), dtype),
            grid_spec=pltpu.PrefetchScalarGridSpec(
                num_scalar_prefetch=0,
                grid=grid,
                in_specs=[pl.BlockSpec((tile_rows, lanes), lambda i: (i, 0))],
                out_specs=pl.BlockSpec((tile_rows, lanes), lambda i: (i, 0)),
            ),
            **common,
        )(x2d)
        return out2d.reshape(orig_shape)

    # --- ragged flat size: zero-copy (1, total) view, masked final block -------
    # (No jnp.pad / output slice -> no extra full HBM passes.)
    x2d = x_flat.reshape(1, total)
    # A (1, L) block occupies 8 sublanes per (8,128) VMEM tile -> budget L by 8x.
    max_len = max(128, (block_bytes // (8 * itemsize)) // 128 * 128)
    if total <= max_len:
        tile_len = total                     # block == full array extent
    else:
        n_steps = -(-total // max_len)
        if num_tc > 1 and n_steps % num_tc:
            n_steps += num_tc - (n_steps % num_tc)
        tile_len = min(max_len, _round_up(-(-total // n_steps), 128))
    grid = (pl.cdiv(total, tile_len),)
    out2d = pl.pallas_call(
        _h_swish_kernel,
        out_shape=jax.ShapeDtypeStruct((1, total), dtype),
        grid_spec=pltpu.PrefetchScalarGridSpec(
            num_scalar_prefetch=0,
            grid=grid,
            in_specs=[pl.BlockSpec((1, tile_len), lambda i: (0, i))],
            out_specs=pl.BlockSpec((1, tile_len), lambda i: (0, i)),
        ),
        **common,
    )(x2d)
    return out2d.reshape(orig_shape)


def _h_swish_ref(x):
    return x * (jnp.clip(x + 3.0, 0.0, 6.0) / 6.0)


if __name__ == "__main__":
    key = jax.random.PRNGKey(0)

    # Primary case (matches the PyTorch module's NCHW usage): zero-copy 2-D path.
    x = jax.random.normal(key, (2, 4, 16, 16), dtype=jnp.float32) * 4.0
    out = h_swish(x)
    jax.block_until_ready(out)
    ref = _h_swish_ref(x)
    assert out.shape == x.shape and out.dtype == x.dtype
    assert jnp.allclose(out, ref, atol=1e-6, rtol=1e-6)

    # Ragged case (flat size not a multiple of 128): masked-tail path, no pad/slice.
    x2 = jax.random.normal(jax.random.PRNGKey(1), (2, 3, 15, 17), dtype=jnp.float32) * 4.0
    out2 = h_swish(x2)
    jax.block_until_ready(out2)
    ref2 = _h_swish_ref(x2)
    assert out2.shape == x2.shape and out2.dtype == x2.dtype
    assert jnp.allclose(out2, ref2, atol=1e-6, rtol=1e-6)

    # bf16 case: dtype-native compute inside the kernel (matches PyTorch half path).
    x3 = (jax.random.normal(jax.random.PRNGKey(2), (2, 4, 16, 16), dtype=jnp.float32)
          * 4.0).astype(jnp.bfloat16)
    out3 = h_swish(x3)
    jax.block_until_ready(out3)
    ref3 = _h_swish_ref(x3.astype(jnp.float32))
    assert out3.shape == x3.shape and out3.dtype == x3.dtype
    assert jnp.allclose(out3.astype(jnp.float32), ref3, atol=5e-2, rtol=5e-2)

    print("KERNEL_OK")
</pallas_src>

<mosaic_0001>
module attributes {stable_mosaic.version = 11 : i64} {
  func.func @_h_swish_kernel(%arg0: i32, %arg1: memref<8x256xf32, #tpu.memory_space<vmem>>, %arg2: memref<8x256xf32, #tpu.memory_space<vmem>>) attributes {dimension_semantics = [#tpu.dimension_semantics<parallel>], iteration_bounds = array<i64: 1>, scalar_prefetch = 0 : i64, scratch_operands = 0 : i64, tpu.core_type = #tpu.core_type<tc>, window_params = [{transform_indices = @transform_0, window_bounds = array<i64: 8, 256>}, {transform_indices = @transform_1, window_bounds = array<i64: 8, 256>}]} {
    %c0 = arith.constant 0 : index
    %c0_0 = arith.constant 0 : index
    %0 = vector.load %arg1[%c0, %c0_0] : memref<8x256xf32, #tpu.memory_space<vmem>>, vector<8x256xf32>
    %cst = arith.constant 3.000000e+00 : f32
    %1 = vector.broadcast %cst : f32 to vector<8x256xf32>
    %2 = arith.addf %0, %1 : vector<8x256xf32>
    %cst_1 = arith.constant 0.000000e+00 : f32
    %cst_2 = arith.constant 6.000000e+00 : f32
    %3 = vector.broadcast %cst_1 : f32 to vector<8x256xf32>
    %4 = arith.maximumf %3, %2 : vector<8x256xf32>
    %5 = vector.broadcast %cst_2 : f32 to vector<8x256xf32>
    %6 = arith.minimumf %5, %4 : vector<8x256xf32>
    %cst_3 = arith.constant 0.166666672 : f32
    %7 = vector.broadcast %cst_3 : f32 to vector<8x256xf32>
    %8 = arith.mulf %6, %7 : vector<8x256xf32>
    %9 = arith.mulf %0, %8 : vector<8x256xf32>
    %c0_4 = arith.constant 0 : index
    %c0_5 = arith.constant 0 : index
    %10 = vector.load %arg2[%c0_4, %c0_5] : memref<8x256xf32, #tpu.memory_space<vmem>>, vector<8x256xf32>
    tpu.vector_store %arg2[%c0_4, %c0_5], %9 {strides = array<i32>} : memref<8x256xf32, #tpu.memory_space<vmem>>, vector<8x256xf32>,
    return
  }
  func.func @transform_0(%arg0: i32) -> (i32, i32) {
    %c0_i32 = arith.constant 0 : i32
    %c0_i32_0 = arith.constant 0 : i32
    return %arg0, %c0_i32 : i32, i32
  }
  func.func @transform_1(%arg0: i32) -> (i32, i32) {
    %c0_i32 = arith.constant 0 : i32
    %c0_i32_0 = arith.constant 0 : i32
    return %arg0, %c0_i32 : i32, i32
  }
}

</mosaic_0001>

<bundles_post_ra>
// kernel: tpu_custom_call.1
= control target key start
LH: loop header
LB: loop body
LE: loop exit
PB: predicated region body
PF: predicated region fallthrough
CT: control target
= control target key end

     0   :  { %6 = vsyncpa [#allocation3], 0  ;;  %s114_s0 = inlined_call_operand.hbm [shape: f32[8,256], index: 0, kind: input, shape index: {}]   ;;  %s115_s1 = inlined_call_operand.hbm [shape: f32[8,256], index: 1, kind: output, shape index: {}]  }
   0x1   :  { %7 = vsyncpa [#allocation4], 0  ;;  %s96_s6 = smov [#allocation2]  }
   0x2   :  { %s14_s7 = sshll.u32 %s96_s6, 4  ;;  %s15_s7 = int_to_ptr.vmem [resolvable:$true] %s14_s7 }
   0x3   :  { %s60_s8 = scalar_lea.vmem %s15_s7, 256  ;;  %p65_p1 = scmp.lt.s32.totalorder %s15_s7, %s15_s7 }
   0x4   :  { %p61_p0 = scmp.ne.s32.totalorder %s15_s7, %s60_s8  ;;  %p66_p2 = scmp.lt.s32.totalorder %s60_s8, %s60_s8 }
   0x6   :  { %p67_p3 = por %p66_p2, %p65_p1 }
   0x8   :  { %p68_p4 = pnand %p67_p3, %p61_p0 }
   0xa   :  { %71 = shalt.err (!%p68_p4)
}
   0xb   :  { %17 = dma.hbm_to_vmem [thread:$0]  %s114_s0, 256, %s15_s7, [#allocation3]  }
   0xc   :  { %92 = dma.done.wait [#allocation3], 256  }
   0xd   :  { %93 = vsyncadd [#allocation3], 4294967040  ;;  %v21_v0 = vld [vmem:[#allocation2] sm:$0xff]  ;;  %v22_v1 = vld [vmem:[#allocation2 + $0x8] sm:$0xff]  ;;  %s97_s11 = smov [#allocation5]  }
   0xe   :  { %v23_v2 = vadd.f32 3.0, %v21_v0  ;;  %v24_v3 = vadd.f32 3.0, %v22_v1  ;;  %s41_s12 = sshll.u32 %s97_s11, 4  ;;  %s42_s12 = int_to_ptr.vmem [resolvable:$true] %s41_s12 }
   0xf   :  { %s72_s0 = scalar_lea.vmem %s42_s12, 256  ;;  %p77_p6 = scmp.lt.s32.totalorder %s42_s12, %s42_s12 }
  0x10   :  { %v25_v4 = vmax.f32 %v23_v2, 0.0  ;;  %v26_v5 = vmax.f32 %v24_v3, 0.0  ;;  %p73_p5 = scmp.ne.s32.totalorder %s42_s12, %s72_s0  ;;  %p78_p7 = scmp.lt.s32.totalorder %s72_s0, %s72_s0 }
  0x12   :  { %v27_v6 = vmin.f32 %v25_v4, 6.0  ;;  %v28_v7 = vmin.f32 %v26_v5, 6.0  ;;  %p79_p8 = por %p78_p7, %p77_p6 }
  0x14   :  { %v29_v8 = vmul.f32 0.16666667, %v27_v6  ;;  %v30_v9 = vmul.f32 0.16666667, %v28_v7  ;;  %p80_p9 = pnand %p79_p8, %p73_p5 }
  0x16   :  { %v31_v10 = vmul.f32 %v29_v8, %v21_v0  ;;  %v32_v11 = vmul.f32 %v30_v9, %v22_v1 }
  0x18   :  { %33 = vst [vmem:[#allocation5] sm:$0xff] %v31_v10  ;;  %34 = vst [vmem:[#allocation5 + $0x8] sm:$0xff] %v32_v11 }
  0x19   :  { %83 = shalt.err (!%p80_p9)
}
  0x1a   :  { %44 = dma.vmem_to_hbm [thread:$0]  %s42_s12, 256, %s115_s1, [#allocation4]  }
  0x1b   :  { %94 = dma.done.wait [#allocation4], 256  }
  0x1c   :  { %95 = vsyncadd [#allocation4], 4294967040 }
  0x1d   :  { %48 = vsyncpa [#allocation3], 1 }
  0x1e   :  { %49 = vsyncpa [#allocation4], 1 }

</bundles_post_ra>
